<compile_context>
chip_gen: v6e
topology: v6e:2x2x1
jax: 0.10.0
libtpu: 0.0.40
codegen_flags: <defaults>
</compile_context>

<pallas_src>
import jax
import jax.numpy as jnp
from jax.experimental import pallas as pl
from jax.experimental.pallas import tpu as pltpu

# ---------------- sizes (small, consistent with the module's forward) ----------------
B = 8            # batch
S = 32           # raw state dim
G = 16           # raw goal dim
M = 32           # memory dim
H_ENC = 32       # encoded state dim
H_GOAL = 16      # encoded goal dim
H_ACT = 32       # actor hidden
A = 8            # ACTION_SIZE  -> pi has 3*A features, actions = pi[:, :A]
PI = 3 * A
H_CRT = 32       # critic hidden
N_CRITICS = 2
N_AGENTS = 1     # states.view(-1, states.shape[1] // n_agents) is the identity

# packed layouts --------------------------------------------------------------
GSM = G + S + M                      # 80 : real activation width [goals | states | memory]
X_W = 128                            # lane-dense activation slab width (zero padded 80 -> 128)
WCOL = N_CRITICS * H_CRT             # 64 : common (max) column width of the weight/bias slabs
K_ACT = H_GOAL + H_ENC               # 48 : [goals_enc | states_] width
K_CRT = G + H_ENC + A                # 56 : [goals | states_ | actions] width

# weight slab rows (all offsets sublane-aligned, multiples of 8)
R_E0, R_E1 = 0, X_W                  # rows   0..128 : fused block-diag encoder W01 (128, 48)
R_A10, R_A11 = R_E1, R_E1 + K_ACT    # rows 128..176 : W_act1 = [Wa_g; Wa_s]       (48, 32)
R_A20, R_A21 = R_A11, R_A11 + H_ACT  # rows 176..208 : Wa2                         (32, 24)
R_C0, R_C1 = R_A21, R_A21 + K_CRT    # rows 208..264 : W_crt1 (both critics)       (56, 64)
W_ROWS = R_C1                        # 264

# bias slab rows: 0 [bg|be](48) | 1 ba1(32) | 2 ba2(24) | 3 bc1_all(64) | 4 wc2_all(64) | 5 bc2_all(2)
B_ROWS = 6

OUT_W = 128                          # lane-dense packed output [q | pi | pad]


def ac_kernel(x_ref, w_ref, b_ref, out_ref):
    f32 = jnp.float32
    x = x_ref[...]                                   # (BT, 128): [goals|states|memory|0]
    b = b_ref[...]                                   # (6, 64) bias/row-vector slab

    # Fused encoders (block-diagonal weight, zero pad rows contribute exactly 0):
    #   enc01 = tanh(x @ W01 + [bg|be])  ->  cols [goals_enc(0:16) | states_(16:48)]
    enc01 = jnp.tanh(jnp.dot(x, w_ref[R_E0:R_E1, 0:K_ACT], preferred_element_type=f32)
                     + b[0:1, 0:K_ACT])

    # actor layer 1: input is already [goals_enc | states_] -> use enc01 directly
    h_a = jnp.tanh(jnp.dot(enc01, w_ref[R_A10:R_A11, 0:H_ACT], preferred_element_type=f32)
                   + b[1:2, 0:H_ACT])

    # actor layer 2: pi = h_a @ Wa2 + ba2
    pi = jnp.dot(h_a, w_ref[R_A20:R_A21, 0:PI], preferred_element_type=f32) + b[2:3, 0:PI]
    actions = pi[:, :A]                              # pi[:, : pi.shape[-1]//3]

    # critics, K-fused and N-stacked across both critics:
    #   h_c = tanh([goals | states_ | actions] @ [Wc_g;Wc_s;Wc_a](both) + bc1_all)
    x_crt = jnp.concatenate([x[:, :G], enc01[:, H_GOAL:K_ACT], actions], axis=-1)  # (BT, 56)
    h_c = jnp.tanh(jnp.dot(x_crt, w_ref[R_C0:R_C1, 0:WCOL], preferred_element_type=f32)
                   + b[3:4, 0:WCOL])                 # (BT, 64)

    # second critic layer: N=1 matmuls -> VPU multiply + lane reduction over both segments.
    # q = mean_i (sum_j h_c_i[:, j] * wc2[i][j] + bc2[i])
    wc2_row = b[4:5, 0:WCOL]                         # (1, 64)
    bc2_sum = b[5:6, 0:1] + b[5:6, 1:2]              # (1, 1)
    q = (jnp.sum(h_c * wc2_row, axis=-1, keepdims=True) + bc2_sum) * (1.0 / N_CRITICS)

    # lane-dense output block: two static lane-slice stores (lanes 25..127 never read)
    out_ref[:, 0:1] = q
    out_ref[:, 1:1 + PI] = pi


# ---------------- packing helpers (hoisted OUT of the per-call path) ----------------

def pack_params(params):
    """Pack the 16 parameter tensors into one weight slab and one bias slab.

    Call this ONCE when params are created/updated; pass the slabs straight into
    actor_critic_forward (do not re-pack per forward call).
    """
    (we_s, we_m, be, wg, bg, wa_g, wa_s, ba1, wa2, ba2,
     wc_g, wc_s, wc_a, bc1, wc2, bc2) = params

    # fused block-diagonal encoder weight (128, 48); rows match the x slab layout
    w01 = jnp.zeros((X_W, K_ACT), jnp.float32)
    w01 = w01.at[0:G, 0:H_GOAL].set(wg)                              # goals  -> goals_enc
    w01 = w01.at[G:G + S, H_GOAL:K_ACT].set(we_s)                    # states -> states_
    w01 = w01.at[G + S:G + S + M, H_GOAL:K_ACT].set(we_m)            # memory -> states_

    w_act1 = jnp.concatenate([wa_g, wa_s], axis=0)                   # (48, 32)
    # per-critic K concat [Wc_g; Wc_s; Wc_a], then critics stacked along N
    w_crt = jnp.concatenate([wc_g, wc_s, wc_a], axis=1)              # (N, 56, 32)
    w_crt1 = jnp.concatenate([w_crt[i] for i in range(N_CRITICS)], axis=-1)  # (56, 64)

    def pad_cols(w):
        return jnp.pad(w, ((0, 0), (0, WCOL - w.shape[1])))

    w_slab = jnp.concatenate(
        [pad_cols(w01), pad_cols(w_act1), pad_cols(wa2), pad_cols(w_crt1)],
        axis=0)                                                      # (264, 64)

    b01 = jnp.concatenate([bg, be], axis=-1)                                     # (1, 48)
    bc1_row = jnp.concatenate([bc1[i] for i in range(N_CRITICS)], axis=-1)       # (1, 64)
    wc2_row = jnp.concatenate([wc2[i].T for i in range(N_CRITICS)], axis=-1)     # (1, 64)
    bc2_row = jnp.concatenate([bc2[i] for i in range(N_CRITICS)], axis=-1)       # (1, 2)

    b_slab = jnp.concatenate(
        [pad_cols(b01), pad_cols(ba1), pad_cols(ba2),
         pad_cols(bc1_row), pad_cols(wc2_row), pad_cols(bc2_row)],
        axis=0)                                                      # (6, 64)
    return w_slab, b_slab


def pack_inputs(goals, states, memory):
    """Lane-dense (B, 128) activation slab [goals | states | memory | 0-pad].

    In a real pipeline the upstream producer should emit this slab directly (or the three
    tensors can be passed as three separate in_specs); it is kept out of the hot wrapper.
    """
    x = jnp.concatenate([goals, states, memory], axis=-1)            # (B, 80)
    return jnp.pad(x, ((0, 0), (0, X_W - GSM)))                      # (B, 128)


def _default_batch_tile(bsz):
    if bsz <= 8:
        return bsz
    # >=2 tiles so v7x's second TensorCore gets work; up to 256 rows per tile to amortize
    # per-grid-step overhead and fill MXU rows (VMEM footprint stays <1 MiB regardless).
    bt = min(256, pl.cdiv(bsz, 2))
    return max(8, ((bt + 7) // 8) * 8)


def actor_critic_forward(x_packed, w_slab, b_slab, *, batch_tile=None):
    bsz = x_packed.shape[0]
    bt = _default_batch_tile(bsz) if batch_tile is None else batch_tile
    grid = (pl.cdiv(bsz, bt),)
    # NOTE: a trailing partial batch tile is safe — every op is row-independent and
    # out-of-range output rows are clipped by Pallas.

    out = pl.pallas_call(
        ac_kernel,
        out_shape=jax.ShapeDtypeStruct((bsz, OUT_W), jnp.float32),
        grid_spec=pltpu.PrefetchScalarGridSpec(
            num_scalar_prefetch=0,
            grid=grid,
            in_specs=[
                pl.BlockSpec((bt, X_W), lambda i: (i, 0)),          # batch-tiled activations
                pl.BlockSpec((W_ROWS, WCOL), lambda i: (0, 0)),     # weights resident in VMEM
                pl.BlockSpec((B_ROWS, WCOL), lambda i: (0, 0)),     # biases  resident in VMEM
            ],
            out_specs=pl.BlockSpec((bt, OUT_W), lambda i: (i, 0)),  # lane-dense output
        ),
        compiler_params=pltpu.CompilerParams(
            dimension_semantics=("parallel",)),                     # shard batch tiles across TCs
    )(x_packed, w_slab, b_slab)

    q = out[:, :1]
    pi = out[:, 1:1 + PI]
    actions = pi[:, :A]
    return q, pi, actions


# ---------------- reference & test harness ----------------

def init_params(key):
    def lin(k, shape, fan_in):
        return (jax.random.uniform(k, shape, jnp.float32, -1.0, 1.0)
                / jnp.sqrt(jnp.float32(fan_in)))

    ks = jax.random.split(key, 16)
    we_s = lin(ks[0], (S, H_ENC), S)
    we_m = lin(ks[1], (M, H_ENC), M)
    be = lin(ks[2], (1, H_ENC), S)
    wg = lin(ks[3], (G, H_GOAL), G)
    bg = lin(ks[4], (1, H_GOAL), G)
    wa_g = lin(ks[5], (H_GOAL, H_ACT), H_GOAL + H_ENC)
    wa_s = lin(ks[6], (H_ENC, H_ACT), H_GOAL + H_ENC)
    ba1 = lin(ks[7], (1, H_ACT), H_GOAL + H_ENC)
    wa2 = lin(ks[8], (H_ACT, PI), H_ACT)
    ba2 = lin(ks[9], (1, PI), H_ACT)
    wc_g = lin(ks[10], (N_CRITICS, G, H_CRT), G + H_ENC + A)
    wc_s = lin(ks[11], (N_CRITICS, H_ENC, H_CRT), G + H_ENC + A)
    wc_a = lin(ks[12], (N_CRITICS, A, H_CRT), G + H_ENC + A)
    bc1 = lin(ks[13], (N_CRITICS, 1, H_CRT), G + H_ENC + A)
    wc2 = lin(ks[14], (N_CRITICS, H_CRT, 1), H_CRT)
    bc2 = lin(ks[15], (N_CRITICS, 1, 1), H_CRT)
    return (we_s, we_m, be, wg, bg, wa_g, wa_s, ba1, wa2, ba2,
            wc_g, wc_s, wc_a, bc1, wc2, bc2)


def reference_forward(goals, states, memory, params):
    (we_s, we_m, be, wg, bg, wa_g, wa_s, ba1, wa2, ba2,
     wc_g, wc_s, wc_a, bc1, wc2, bc2) = params
    states_ = jnp.tanh(states @ we_s + memory @ we_m + be)
    goals_enc = jnp.tanh(goals @ wg + bg)
    h_a = jnp.tanh(goals_enc @ wa_g + states_ @ wa_s + ba1)
    pi = h_a @ wa2 + ba2
    actions = pi[:, : PI // 3]
    qs = []
    for i in range(N_CRITICS):
        h_c = jnp.tanh(goals @ wc_g[i] + states_ @ wc_s[i] + actions @ wc_a[i] + bc1[i])
        qs.append(h_c @ wc2[i] + bc2[i])
    q = jnp.concatenate(qs, axis=1).mean(axis=1, keepdims=True)
    return q, pi, actions


if __name__ == "__main__":
    key = jax.random.PRNGKey(0)
    k_g, k_s, k_m, k_p = jax.random.split(key, 4)
    goals = jax.random.normal(k_g, (B, G), jnp.float32)
    states = jax.random.normal(k_s, (B, S), jnp.float32)
    memory = jax.random.normal(k_m, (B, M), jnp.float32)
    params = init_params(k_p)

    # Pack ONCE (outside the per-call path); re-pack only when params change.
    w_slab, b_slab = pack_params(params)
    w_slab, b_slab = jax.block_until_ready((w_slab, b_slab))
    x_packed = jax.block_until_ready(pack_inputs(goals, states, memory))

    q, pi, actions = actor_critic_forward(x_packed, w_slab, b_slab)
    jax.block_until_ready((q, pi, actions))

    q_ref, pi_ref, act_ref = reference_forward(goals, states, memory, params)
    assert q.shape == (B, 1) and pi.shape == (B, PI) and actions.shape == (B, A)
    assert jnp.allclose(q, q_ref, atol=1e-5), "q mismatch"
    assert jnp.allclose(pi, pi_ref, atol=1e-5), "pi mismatch"
    assert jnp.allclose(actions, act_ref, atol=1e-5), "actions mismatch"

    print("KERNEL_OK")
</pallas_src>

<mosaic_0001>
module attributes {stable_mosaic.version = 11 : i64} {
  func.func @ac_kernel(%arg0: i32, %arg1: memref<8x128xf32, #tpu.memory_space<vmem>>, %arg2: memref<264x64xf32, #tpu.memory_space<vmem>>, %arg3: memref<6x64xf32, #tpu.memory_space<vmem>>, %arg4: memref<8x128xf32, #tpu.memory_space<vmem>>) attributes {dimension_semantics = [#tpu.dimension_semantics<parallel>], iteration_bounds = array<i64: 1>, scalar_prefetch = 0 : i64, scratch_operands = 0 : i64, tpu.core_type = #tpu.core_type<tc>, window_params = [{transform_indices = @transform_0, window_bounds = array<i64: 8, 128>}, {pipeline_mode = #tpu.pipeline_mode<synchronous>, transform_indices = @transform_1, window_bounds = array<i64: 264, 64>}, {pipeline_mode = #tpu.pipeline_mode<synchronous>, transform_indices = @transform_2, window_bounds = array<i64: 6, 64>}, {transform_indices = @transform_3, window_bounds = array<i64: 8, 128>}]} {
    %c0 = arith.constant 0 : index
    %c0_0 = arith.constant 0 : index
    %0 = vector.load %arg1[%c0, %c0_0] : memref<8x128xf32, #tpu.memory_space<vmem>>, vector<8x128xf32>
    %c0_1 = arith.constant 0 : index
    %c0_2 = arith.constant 0 : index
    %1 = vector.load %arg3[%c0_1, %c0_2] : memref<6x64xf32, #tpu.memory_space<vmem>>, vector<6x64xf32>
    %c0_3 = arith.constant 0 : index
    %c0_4 = arith.constant 0 : index
    %2 = vector.load %arg2[%c0_3, %c0_4] : memref<264x64xf32, #tpu.memory_space<vmem>>, vector<128x48xf32>
    %cst = arith.constant dense<0.000000e+00> : vector<8x48xf32>
    %3 = tpu.matmul %0, %2, %cst {dimension_numbers = #tpu.dot_dimension_numbers<[1], [0], [0], [1], [0, 0, 1, 1], [], []>} : vector<8x128xf32>, vector<128x48xf32>, vector<8x48xf32> -> vector<8x48xf32>
    %4 = vector.extract_strided_slice %1 {offsets = [0, 0], sizes = [1, 48], strides = [1, 1]} : vector<6x64xf32> to vector<1x48xf32>
    %5 = vector.broadcast %4 : vector<1x48xf32> to vector<8x48xf32>
    %6 = arith.addf %3, %5 : vector<8x48xf32>
    %7 = math.tanh %6 : vector<8x48xf32>
    %c128 = arith.constant 128 : index
    %c0_5 = arith.constant 0 : index
    %8 = vector.load %arg2[%c128, %c0_5] : memref<264x64xf32, #tpu.memory_space<vmem>>, vector<48x32xf32>
    %cst_6 = arith.constant dense<0.000000e+00> : vector<8x32xf32>
    %9 = tpu.matmul %7, %8, %cst_6 {dimension_numbers = #tpu.dot_dimension_numbers<[1], [0], [0], [1], [0, 0, 1, 1], [], []>} : vector<8x48xf32>, vector<48x32xf32>, vector<8x32xf32> -> vector<8x32xf32>
    %10 = vector.extract_strided_slice %1 {offsets = [1, 0], sizes = [1, 32], strides = [1, 1]} : vector<6x64xf32> to vector<1x32xf32>
    %11 = vector.broadcast %10 : vector<1x32xf32> to vector<8x32xf32>
    %12 = arith.addf %9, %11 : vector<8x32xf32>
    %13 = math.tanh %12 : vector<8x32xf32>
    %c176 = arith.constant 176 : index
    %c0_7 = arith.constant 0 : index
    %14 = vector.load %arg2[%c176, %c0_7] : memref<264x64xf32, #tpu.memory_space<vmem>>, vector<32x24xf32>
    %cst_8 = arith.constant dense<0.000000e+00> : vector<8x24xf32>
    %15 = tpu.matmul %13, %14, %cst_8 {dimension_numbers = #tpu.dot_dimension_numbers<[1], [0], [0], [1], [0, 0, 1, 1], [], []>} : vector<8x32xf32>, vector<32x24xf32>, vector<8x24xf32> -> vector<8x24xf32>
    %16 = vector.extract_strided_slice %1 {offsets = [2, 0], sizes = [1, 24], strides = [1, 1]} : vector<6x64xf32> to vector<1x24xf32>
    %17 = vector.broadcast %16 : vector<1x24xf32> to vector<8x24xf32>
    %18 = arith.addf %15, %17 : vector<8x24xf32>
    %19 = vector.extract_strided_slice %18 {offsets = [0, 0], sizes = [8, 8], strides = [1, 1]} : vector<8x24xf32> to vector<8x8xf32>
    %20 = vector.extract_strided_slice %0 {offsets = [0, 0], sizes = [8, 16], strides = [1, 1]} : vector<8x128xf32> to vector<8x16xf32>
    %21 = vector.extract_strided_slice %7 {offsets = [0, 16], sizes = [8, 32], strides = [1, 1]} : vector<8x48xf32> to vector<8x32xf32>
    %22 = tpu.concatenate %20, %21, %19 in 1 : vector<8x16xf32>, vector<8x32xf32>, vector<8x8xf32> -> vector<8x56xf32>
    %c208 = arith.constant 208 : index
    %c0_9 = arith.constant 0 : index
    %23 = vector.load %arg2[%c208, %c0_9] : memref<264x64xf32, #tpu.memory_space<vmem>>, vector<56x64xf32>
    %cst_10 = arith.constant dense<0.000000e+00> : vector<8x64xf32>
    %24 = tpu.matmul %22, %23, %cst_10 {dimension_numbers = #tpu.dot_dimension_numbers<[1], [0], [0], [1], [0, 0, 1, 1], [], []>} : vector<8x56xf32>, vector<56x64xf32>, vector<8x64xf32> -> vector<8x64xf32>
    %25 = vector.extract_strided_slice %1 {offsets = [3, 0], sizes = [1, 64], strides = [1, 1]} : vector<6x64xf32> to vector<1x64xf32>
    %26 = vector.broadcast %25 : vector<1x64xf32> to vector<8x64xf32>
    %27 = arith.addf %24, %26 : vector<8x64xf32>
    %28 = math.tanh %27 : vector<8x64xf32>
    %29 = vector.extract_strided_slice %1 {offsets = [4, 0], sizes = [1, 64], strides = [1, 1]} : vector<6x64xf32> to vector<1x64xf32>
    %30 = vector.extract_strided_slice %1 {offsets = [5, 0], sizes = [1, 1], strides = [1, 1]} : vector<6x64xf32> to vector<1x1xf32>
    %31 = vector.extract_strided_slice %1 {offsets = [5, 1], sizes = [1, 1], strides = [1, 1]} : vector<6x64xf32> to vector<1x1xf32>
    %32 = arith.addf %30, %31 : vector<1x1xf32>
    %33 = vector.broadcast %29 : vector<1x64xf32> to vector<8x64xf32>
    %34 = arith.mulf %28, %33 : vector<8x64xf32>
    %cst_11 = arith.constant dense<0.000000e+00> : vector<8xf32>
    %35 = vector.multi_reduction <add>, %34, %cst_11 [1] : vector<8x64xf32> to vector<8xf32>
    %36 = vector.shape_cast %35 : vector<8xf32> to vector<8x1xf32>
    %37 = vector.broadcast %32 : vector<1x1xf32> to vector<8x1xf32>
    %38 = arith.addf %36, %37 : vector<8x1xf32>
    %cst_12 = arith.constant 5.000000e-01 : f32
    %39 = vector.broadcast %cst_12 : f32 to vector<8x1xf32>
    %40 = arith.mulf %38, %39 : vector<8x1xf32>
    %c0_13 = arith.constant 0 : index
    %c0_14 = arith.constant 0 : index
    %41 = vector.load %arg4[%c0_13, %c0_14] : memref<8x128xf32, #tpu.memory_space<vmem>>, vector<8x1xf32>
    tpu.vector_store %arg4[%c0_13, %c0_14], %40 {strides = array<i32>} : memref<8x128xf32, #tpu.memory_space<vmem>>, vector<8x1xf32>,
    %c0_15 = arith.constant 0 : index
    %c1 = arith.constant 1 : index
    %42 = vector.load %arg4[%c0_15, %c1] : memref<8x128xf32, #tpu.memory_space<vmem>>, vector<8x24xf32>
    tpu.vector_store %arg4[%c0_15, %c1], %18 {strides = array<i32>} : memref<8x128xf32, #tpu.memory_space<vmem>>, vector<8x24xf32>,
    return
  }
  func.func @transform_0(%arg0: i32) -> (i32, i32) {
    %c0_i32 = arith.constant 0 : i32
    %c0_i32_0 = arith.constant 0 : i32
    return %arg0, %c0_i32 : i32, i32
  }
  func.func @transform_1(%arg0: i32) -> (i32, i32) {
    %c0_i32 = arith.constant 0 : i32
    %c0_i32_0 = arith.constant 0 : i32
    %c0_i32_1 = arith.constant 0 : i32
    return %c0_i32, %c0_i32_0 : i32, i32
  }
  func.func @transform_2(%arg0: i32) -> (i32, i32) {
    %c0_i32 = arith.constant 0 : i32
    %c0_i32_0 = arith.constant 0 : i32
    %c0_i32_1 = arith.constant 0 : i32
    return %c0_i32, %c0_i32_0 : i32, i32
  }
  func.func @transform_3(%arg0: i32) -> (i32, i32) {
    %c0_i32 = arith.constant 0 : i32
    %c0_i32_0 = arith.constant 0 : i32
    return %arg0, %c0_i32 : i32, i32
  }
}

</mosaic_0001>

<bundles_post_ra>
// kernel: tpu_custom_call.1
= control target key start
LH: loop header
LB: loop body
LE: loop exit
PB: predicated region body
PF: predicated region fallthrough
CT: control target
= control target key end

     0   :  { %v561_v1 = vmov 0.0   ;;  %vm562_vm0 = vmmov 0   ;;  %s759_s0 = inlined_call_operand.vmem [shape: f32[8,128], index: 0, kind: input, shape index: {}]   ;;  %s760_s1 = inlined_call_operand.vmem [shape: f32[264,64], index: 1, kind: input, shape index: {}]   ;;  %s761_s2 = inlined_call_operand.vmem [shape: f32[6,64], index: 2, kind: input, shape index: {}]   ;;  %s762_s3 = inlined_call_operand.hbm [shape: f32[8,128], index: 3, kind: output, shape index: {}]  }
   0x1   :  { %v32_v0 = vld [vmem:[%s760_s1 + $0x78] sm:$0xff]  ;;  %449 = vmatprep.subr.mxu0 %v561_v1  ;;  %v31_v2 = vld [vmem:[%s760_s1 + $0x70] sm:$0xff]  ;;  %481 = vmatprep.mubr.msk.f32.mxu0 %vm562_vm0, %v561_v1  ;;  %v30_v3 = vld [vmem:[%s760_s1 + $0x68] sm:$0xff] }
   0x2   :  { %450 = vmatpush3.msra.mxu0 %v32_v0  ;;  %484 = vmatprep.subr.mxu1 %v561_v1  ;;  %v29_v4 = vld [vmem:[%s760_s1 + $0x60] sm:$0xff] }
   0x3   :  { %451 = vmatprep.subr.mxu0 %v561_v1  ;;  %496 = vmatprep.mubr.msk.f32.mxu1 %vm562_vm0, %v561_v1 }
   0x4   :  { %452 = vmatpush3.msra.mxu0 %v31_v2 }
   0x5   :  { %453 = vmatprep.subr.mxu0 %v561_v1 }
   0x6   :  { %454 = vmatpush3.msra.mxu0 %v30_v3 }
   0x7   :  { %8 = vsyncpa [#allocation3], 0  ;;  %455 = vmatprep.subr.mxu0 %v561_v1  ;;  %v28_v5 = vld [vmem:[%s760_s1 + $0x58] sm:$0xff]  ;;  %v27_v6 = vld [vmem:[%s760_s1 + $0x50] sm:$0xff]  ;;  %v33_v24 = vlaneseq  ;;  %vm118_vm1 = vcmask 392192   ;;  %s563_s12 = smov 127  }
   0x8   :  { %456 = vmatpush3.msra.mxu0 %v29_v4  ;;  %v26_v7 = vld [vmem:[%s760_s1 + $0x48] sm:$0xff]  ;;  %v25_v8 = vld [vmem:[%s760_s1 + $0x40] sm:$0xff]  ;;  %v24_v9 = vld [vmem:[%s760_s1 + $0x38] sm:$0xff]  ;;  %vm201_vm2 = vcmask 261120   ;;  %s564_s26 = smov 1   ;;  %s565_s27 = smov 48  }
   0x9   :  { %457 = vmatprep.subr.mxu0 %v561_v1  ;;  %v23_v10 = vld [vmem:[%s760_s1 + $0x30] sm:$0xff]  ;;  %v22_v11 = vld [vmem:[%s760_s1 + $0x28] sm:$0xff]  ;;  %v21_v12 = vld [vmem:[%s760_s1 + $0x20] sm:$0xff]  ;;  %v686_v25 = vshrl.u32 %v33_v24, 7  ;;  %vm279_vm3 = vcmask 130048   ;;  %vm293_vm4 = vcmask 457728  }
   0xa   :  { %458 = vmatpush3.msra.mxu0 %v28_v5  ;;  %v20_v13 = vld [vmem:[%s760_s1 + $0x18] sm:$0xff]  ;;  %v19_v14 = vld [vmem:[%s760_s1 + $0x10] sm:$0xff]  ;;  %v18_v15 = vld [vmem:[%s760_s1 + $0x8] sm:$0xff]  ;;  %vm378_vm5 = vcmask 523264   ;;  %vm388_vm6 = vcmask 7168   ;;  %vm393_vm7 = vcmask 203784  }
   0xb   :  { %459 = vmatprep.subr.mxu0 %v561_v1  ;;  %v17_v16 = vld [vmem:[%s760_s1] sm:$0xff]  ;;  %v113_v18 = vld [vmem:[%s760_s1 + $0xa8] sm:$0xff]  ;;  %v111_v20 = vld [vmem:[%s760_s1 + $0x98] sm:$0xff]  ;;  %v35_v26 = vsub.s32 0, %v686_v25  ;;  %v116_v37 = vsub.s32 1, %v686_v25  ;;  %v199_v50 = vsub.s32 2, %v686_v25 }
   0xc   :  { %460 = vmatpush3.msra.mxu0 %v27_v6  ;;  %v658_v17 = vld [vmem:[%s759_s0] sm:$0xff]  ;;  %485 = vmatpush3.msra.mxu1 %v113_v18  ;;  %v110_v21 = vld [vmem:[%s760_s1 + $0x90] sm:$0xff]  ;;  %v109_v22 = vld [vmem:[%s760_s1 + $0x88] sm:$0xff]  ;;  %v291_v58 = vsub.s32 3, %v686_v25  ;;  %v375_v63 = vsub.s32 4, %v686_v25  ;;  %v384_v6 = vsub.s32 5, %v686_v25 }
   0xd   :  { %461 = vmatprep.subr.mxu0 %v561_v1  ;;  %v112_v19 = vld [vmem:[%s760_s1 + $0xa0] sm:$0xff]  ;;  %486 = vmatprep.subr.mxu1 %v561_v1  ;;  %v196_v33 = vld [vmem:[%s760_s1 + $0xc8] sm:$0xff]  ;;  %v194_v35 = vld [vmem:[%s760_s1 + $0xb8] sm:$0xff] }
   0xe   :  { %462 = vmatpush3.msra.mxu0 %v26_v7  ;;  %487 = vmatpush3.msra.mxu1 %v112_v19  ;;  %v108_v23 = vld [vmem:[%s760_s1 + $0x80] sm:$0xff]  ;;  %v193_v36 = vld [vmem:[%s760_s1 + $0xb0] sm:$0xff]  ;;  %v287_v44 = vld [vmem:[%s760_s1 + $0xf8] sm:$0xff] }
   0xf   :  { %463 = vmatprep.subr.mxu0 %v561_v1  ;;  %488 = vmatprep.subr.mxu1 %v561_v1  ;;  %v692_v27 = vld [vmem:[%s761_s2] sm:$0x3f]  ;;  %v286_v45 = vld [vmem:[%s760_s1 + $0xf0] sm:$0xff]  ;;  %v285_v46 = vld [vmem:[%s760_s1 + $0xe8] sm:$0xff] }
  0x10   :  { %464 = vmatpush3.msra.mxu0 %v25_v8  ;;  %489 = vmatpush3.msra.mxu1 %v111_v20  ;;  %v36_v28 = vrot.slane %v692_v27, %v35_v26  ;;  %v195_v34 = vld [vmem:[%s760_s1 + $0xc0] sm:$0xff]  ;;  %v117_v38 = vrot.slane %v692_v27, %v116_v37  ;;  %v283_v48 = vld [vmem:[%s760_s1 + $0xd8] sm:$0xff]  ;;  %v282_v49 = vld [vmem:[%s760_s1 + $0xd0] sm:$0xff]  ;;  %v200_v51 = vrot.slane %v692_v27, %v199_v50 }
  0x11   :  { %465 = vmatprep.subr.mxu0 %v561_v1  ;;  %490 = vmatprep.subr.mxu1 %v561_v1  ;;  %v288_v43 = vld [vmem:[%s760_s1 + $0x100] sm:$0xff]  ;;  %v292_v59 = vrot.slane %v692_v27, %v291_v58  ;;  %v376_v0 = vrot.slane %v692_v27, %v375_v63 }
  0x12   :  { %466 = vmatpush3.msra.mxu0 %v24_v9  ;;  %491 = vmatpush3.msra.mxu1 %v110_v21  ;;  %v284_v47 = vld [vmem:[%s760_s1 + $0xe0] sm:$0xff]  ;;  %s566_s1 = smov [#allocation2]  }
  0x13   :  { %467 = vmatprep.subr.mxu0 %v561_v1  ;;  %492 = vmatprep.subr.mxu1 %v561_v1  ;;  %s401_s28 = sshll.u32 %s566_s1, 4  ;;  %s402_s28 = int_to_ptr.vmem [resolvable:$true] %s401_s28 }
  0x14   :  { %468 = vmatpush3.msra.mxu0 %v23_v10  ;;  %493 = vmatpush3.msra.mxu1 %v109_v22  ;;  %s539_s29 = scalar_lea.vmem %s402_s28, 128  ;;  %p544_p1 = scmp.lt.s32.totalorder %s402_s28, %s402_s28 }
  0x15   :  { %469 = vmatprep.subr.mxu0 %v561_v1  ;;  %494 = vmatprep.subr.mxu1 %v561_v1  ;;  %p540_p0 = scmp.ne.s32.totalorder %s402_s28, %s539_s29  ;;  %p545_p2 = scmp.lt.s32.totalorder %s539_s29, %s539_s29 }
  0x16   :  { %470 = vmatpush3.msra.mxu0 %v22_v11  ;;  %495 = vmatpush3.msra.mxu1 %v108_v23 }
  0x17   :  { %471 = vmatprep.subr.mxu0 %v561_v1  ;;  %499 = vmatprep.subr.mxu1 %v561_v1  ;;  %p546_p3 = por %p545_p2, %p544_p1 }
  0x18   :  { %472 = vmatpush3.msra.mxu0 %v21_v12  ;;  %369 = vrot.lane.b32.xlu1 %v692_v27, %s563_s12 }
  0x19   :  { %473 = vmatprep.subr.mxu0 %v561_v1  ;;  %p547_p4 = pnand %p546_p3, %p540_p0 }
  0x1a   :  { %474 = vmatpush3.msra.mxu0 %v20_v13 }
  0x1b   :  { %475 = vmatprep.subr.mxu0 %v561_v1 }
  0x1c   :  { %476 = vmatpush3.msra.mxu0 %v19_v14 }
  0x1d   :  { %477 = vmatprep.subr.mxu0 %v561_v1 }
  0x1e   :  { %478 = vmatpush3.msra.mxu0 %v18_v15 }
  0x1f   :  { %479 = vmatprep.subr.mxu0 %v561_v1 }
  0x20   :  { %480 = vmatpush3.msra.mxu0 %v17_v16 }
  0x21   :  { %482 = vmatmul.mubr.f32.vlgmr.msra.gmra.mxu0 %v658_v17 }
  0x8a   :  { %v370_v4 = vpop.permute.xlu1 %369 }
  0x8b   :  { %v372_v5 = vadd.f32 %v370_v4, %v692_v27 }
  0x8d   :  { %v385_v7 = vrot.slane %v372_v5, %v384_v6 }
  0xe1   :  { %v103_v29 = vpop.f32.mrf.mxu0 }
  0xe2   :  { %v104_v30 = vadd.f32 %v103_v29, %v36_v28 }
  0xe3   :  { %v483_v31 = vpop.f32.mrf.mxu0 }
  0xe4   :  { %533 = vtanh.f32 %v104_v30 }
  0xf1   :  { %v534_v32 = vpop.eup %533 }
  0xf2   :  { %497 = vmatmul.mubr.msk.f32.vlgmr.msra.gmra.mxu1 %vm118_vm1, %v534_v32  ;;  %v280_v55 = vsel %vm279_vm3, %v658_v17, %v534_v32 }
  0xf3   :  { %507 = vmatprep.mubr.msk.f32.mxu1 %vm562_vm0, %v561_v1  ;;  %500 = vmatpush3.msra.mxu1 %v196_v33 }
  0xf4   :  { %501 = vmatprep.subr.mxu1 %v561_v1 }
  0xf5   :  { %502 = vmatpush3.msra.mxu1 %v195_v34 }
  0xf6   :  { %503 = vmatprep.subr.mxu1 %v561_v1 }
  0xf7   :  { %504 = vmatpush3.msra.mxu1 %v194_v35 }
  0xf8   :  { %505 = vmatprep.subr.mxu1 %v561_v1 }
  0xf9   :  { %506 = vmatpush3.msra.mxu1 %v193_v36 }
  0xfa   :  { %510 = vmatprep.subr.mxu1 %v561_v1 }
 0x1b2   :  { %v188_v39 = vpop.f32.mrf.mxu1 }
 0x1b3   :  { %v189_v40 = vadd.f32 %v188_v39, %v117_v38 }
 0x1b4   :  { %v498_v41 = vpop.f32.mrf.mxu1 }
 0x1b5   :  { %535 = vtanh.f32 %v189_v40 }
 0x1c2   :  { %v536_v42 = vpop.eup %535 }
 0x1c3   :  { %508 = vmatmul.mubr.msk.f32.vlgmr.msra.gmra.mxu1 %vm201_vm2, %v536_v42 }
 0x1c4   :  { %524 = vmatprep.mubr.msk.f32.mxu1 %vm562_vm0, %v561_v1  ;;  %511 = vmatpush3.msra.mxu1 %v288_v43 }
 0x1c5   :  { %512 = vmatprep.subr.mxu1 %v561_v1 }
 0x1c6   :  { %513 = vmatpush3.msra.mxu1 %v287_v44 }
 0x1c7   :  { %514 = vmatprep.subr.mxu1 %v561_v1 }
 0x1c8   :  { %515 = vmatpush3.msra.mxu1 %v286_v45 }
 0x1c9   :  { %516 = vmatprep.subr.mxu1 %v561_v1 }
 0x1ca   :  { %517 = vmatpush3.msra.mxu1 %v285_v46 }
 0x1cb   :  { %518 = vmatprep.subr.mxu1 %v561_v1 }
 0x1cc   :  { %519 = vmatpush3.msra.mxu1 %v284_v47 }
 0x1cd   :  { %520 = vmatprep.subr.mxu1 %v561_v1 }
 0x1ce   :  { %521 = vmatpush3.msra.mxu1 %v283_v48 }
 0x1cf   :  { %522 = vmatprep.subr.mxu1 %v561_v1 }
 0x1d0   :  { %523 = vmatpush3.msra.mxu1 %v282_v49 }
 0x283   :  { %v271_v52 = vpop.f32.mrf.mxu1 }
 0x284   :  { %v272_v53 = vadd.f32 %v271_v52, %v200_v51 }
 0x285   :  { %v509_v54 = vpop.f32.mrf.mxu1 }
 0x286   :  { %390 = vrot.lane.b32.xlu1 %v272_v53, %s564_s26  ;;  %276 = vrot.lane.b32.xlu0 %v272_v53, %s565_s27 }
 0x2f8   :  { %v277_v56 = vpop.permute.xlu0 %276  ;;  %v391_v11 = vpop.permute.xlu1 %390 }
 0x2f9   :  { %v281_v57 = vsel %vm118_vm1, %v280_v55, %v277_v56 }
 0x2fa   :  { %525 = vmatmul.mubr.msk.f32.vlgmr.msra.gmra.mxu1 %vm293_vm4, %v281_v57 }
 0x3ba   :  { %v363_v60 = vpop.f32.mrf.mxu1 }
 0x3bb   :  { %v364_v61 = vadd.f32 %v363_v60, %v292_v59 }
 0x3bc   :  { %v526_v62 = vpop.f32.mrf.mxu1 }
 0x3bd   :  { %537 = vtanh.f32 %v364_v61 }
 0x3ca   :  { %v538_v1 = vpop.eup %537 }
 0x3cb   :  { %v377_v2 = vmul.f32 %v538_v1, %v376_v0 }
 0x3cd   :  { %v379_v3 = vsel %vm378_vm5, %v377_v2, 0.0 }
 0x3ce   :  { %380 = vadd.xlane.f32.xlu0 %v379_v3 }
 0x457   :  { %v381_v8 = vpop.xlane.xlu0 %380 }
 0x458   :  { %v386_v9 = vadd.f32 %v385_v7, %v381_v8 }
 0x45a   :  { %v387_v10 = vmul.f32 0.5, %v386_v9 }
 0x45c   :  { %389 = vst.msk [vmem:[#allocation2] sm:$0xff] %vm388_vm6, %v387_v10 }
 0x45d   :  { %394 = vst.msk [vmem:[#allocation2] sm:$0xff] %vm393_vm7, %v391_v11 }
 0x45e   :  { %550 = shalt.err (!%p547_p4)
}
 0x45f   :  { %404 = dma.vmem_to_hbm [thread:$0]  %s402_s28, 128, %s762_s3, [#allocation3]  }
 0x460   :  { %559 = dma.done.wait [#allocation3], 128  }
 0x461   :  { %560 = vsyncadd [#allocation3], 4294967168 }
 0x462   :  { %408 = vsyncpa [#allocation3], 1 }

</bundles_post_ra>
